<compile_context>
chip_gen: v6e
topology: v6e:2x2x1
jax: 0.10.0
libtpu: 0.0.40
codegen_flags: <defaults>
</compile_context>

<pallas_src>
import jax
import jax.numpy as jnp
from jax import lax
from jax.experimental import pallas as pl
from jax.experimental.pallas import tpu as pltpu


_TARGET_TILE_BYTES = 8 * 1024 * 1024   # ~8 MiB per tile (good on v5e/v6e/v7x)
_MAX_ROW_BLOCK = 256                   # multiple of 8 (sublane quantum)
_VMEM_LIMIT_BYTES = 40 * 1024 * 1024   # 2 bufs x (in + out) x 8 MiB + headroom


def _scale_kernel(scales_ref, wav_ref, out_ref):
    # scales_ref: (rb, 1) float32 — one scale per (batch, stream) row
    # wav_ref / out_ref: (rb, tb) in the waveform dtype
    out_ref[...] = (wav_ref[...] * scales_ref[...]).astype(out_ref.dtype)


def apply_scale(wav: jax.Array, scales: jax.Array) -> jax.Array:
    """wav: (B, S, C, T), scales: (B, S) -> wav * scales[..., None, None]."""
    B, S, C, T = wav.shape
    rows = B * S
    cols = C * T
    itemsize = jnp.dtype(wav.dtype).itemsize

    # Zero-cost contiguous collapse: rows are (b, s), lanes are (c, t).
    wav2d = wav.reshape(rows, cols)
    scales2d = scales.astype(jnp.float32).reshape(rows, 1)

    # Row block: full row count when small (legal full-dim block), otherwise a
    # sublane-aligned cap.
    rb = rows if rows <= _MAX_ROW_BLOCK else _MAX_ROW_BLOCK

    # Lane block: sized by bytes so the per-step DMA burst is ~_TARGET_TILE_BYTES
    # regardless of dtype (bf16 gets a 2x wider lane block). Rounded down to a
    # multiple of 128 for unmasked full-width stores; full cols is always legal.
    tb_target = max(128, (_TARGET_TILE_BYTES // (rb * itemsize)) // 128 * 128)
    tb = cols if cols <= tb_target else tb_target

    grid = (pl.cdiv(rows, rb), pl.cdiv(cols, tb))

    out2d = pl.pallas_call(
        _scale_kernel,
        out_shape=jax.ShapeDtypeStruct((rows, cols), wav.dtype),
        grid=grid,
        in_specs=[
            pl.BlockSpec((rb, 1), lambda r, c: (r, 0)),
            pl.BlockSpec((rb, tb), lambda r, c: (r, c)),
        ],
        out_specs=pl.BlockSpec((rb, tb), lambda r, c: (r, c)),
        compiler_params=pltpu.CompilerParams(
            dimension_semantics=("parallel", "parallel"),
            vmem_limit_bytes=_VMEM_LIMIT_BYTES,
        ),
        # TODO(synk): add input_output_aliases={1: 0} (in-place augment, halves
        # peak HBM footprint) once the surrounding training loop donates wav.
    )(scales2d, wav2d)

    return out2d.reshape(B, S, C, T)


def scale_forward(wav: jax.Array,
                  key: jax.Array,
                  proba: float = 1.0,
                  min_scale: float = 0.25,
                  max_scale: float = 1.25,
                  training: bool = True) -> jax.Array:
    """JAX/Pallas equivalent of Scale.forward."""
    if not training:
        return wav
    k_apply, k_scales = jax.random.split(key)
    B, S, _, _ = wav.shape
    scales = jax.random.uniform(
        k_scales, (B, S), minval=min_scale, maxval=max_scale, dtype=jnp.float32)

    if proba >= 1.0:
        # random.random() < 1.0 is always true: call the kernel unconditionally.
        return apply_scale(wav, scales)

    # random.random() < proba  ->  deterministic JAX draw; skip the entire
    # HBM read+write pass when the gate is false instead of multiplying by 1.
    apply = jax.random.uniform(k_apply, ()) < proba
    return lax.cond(apply,
                    lambda w: apply_scale(w, scales),
                    lambda w: w,
                    wav)


if __name__ == "__main__":
    key = jax.random.PRNGKey(0)
    k_wav, k_fwd = jax.random.split(key)

    # Small shapes consistent with the module: (batch, streams, channels, time)
    B, S, C, T = 2, 4, 2, 128
    wav = jax.random.normal(k_wav, (B, S, C, T), dtype=jnp.float32)

    # --- proba = 1.0 path (kernel always runs) ---
    out = scale_forward(wav, k_fwd, proba=1.0, min_scale=0.25, max_scale=1.25,
                        training=True)
    out = jax.block_until_ready(out)

    # Pure-JAX reference (same RNG stream as scale_forward)
    k_apply, k_scales = jax.random.split(k_fwd)
    scales_ref = jax.random.uniform(k_scales, (B, S), minval=0.25, maxval=1.25,
                                    dtype=jnp.float32)
    ref = wav * scales_ref[:, :, None, None]
    assert out.shape == wav.shape and out.dtype == wav.dtype
    assert jnp.allclose(out, ref, atol=1e-6, rtol=1e-6)

    # --- proba < 1.0 path (lax.cond short-circuit around the kernel) ---
    proba = 0.3
    out_p = jax.block_until_ready(
        scale_forward(wav, k_fwd, proba=proba, training=True))
    apply_ref = jax.random.uniform(k_apply, ()) < proba
    ref_p = jnp.where(apply_ref, ref, wav)
    assert jnp.allclose(out_p, ref_p, atol=1e-6, rtol=1e-6)

    # --- eval mode is identity ---
    out_eval = scale_forward(wav, k_fwd, training=False)
    assert out_eval is wav

    # --- bf16 waveform exercises byte-sized tiling + the explicit dtype cast ---
    wav_bf = wav.astype(jnp.bfloat16)
    out_bf = jax.block_until_ready(scale_forward(wav_bf, k_fwd, proba=1.0))
    ref_bf = (wav_bf * scales_ref[:, :, None, None]).astype(jnp.bfloat16)
    assert out_bf.shape == wav_bf.shape and out_bf.dtype == jnp.bfloat16
    assert jnp.allclose(out_bf.astype(jnp.float32), ref_bf.astype(jnp.float32),
                        atol=1e-2, rtol=1e-2)

    print("KERNEL_OK")
</pallas_src>

<mosaic_0001>
module attributes {stable_mosaic.version = 11 : i64} {
  func.func @_scale_kernel(%arg0: i32, %arg1: i32, %arg2: memref<8x1xf32, #tpu.memory_space<vmem>>, %arg3: memref<8x256xf32, #tpu.memory_space<vmem>>, %arg4: memref<8x256xf32, #tpu.memory_space<vmem>>) attributes {dimension_semantics = [#tpu.dimension_semantics<parallel>, #tpu.dimension_semantics<parallel>], iteration_bounds = array<i64: 1, 1>, scalar_prefetch = 0 : i64, scratch_operands = 0 : i64, tpu.core_type = #tpu.core_type<tc>, window_params = [{transform_indices = @transform_0, window_bounds = array<i64: 8, 1>}, {transform_indices = @transform_1, window_bounds = array<i64: 8, 256>}, {transform_indices = @transform_2, window_bounds = array<i64: 8, 256>}]} {
    %c0 = arith.constant 0 : index
    %c0_0 = arith.constant 0 : index
    %0 = vector.load %arg3[%c0, %c0_0] : memref<8x256xf32, #tpu.memory_space<vmem>>, vector<8x256xf32>
    %c0_1 = arith.constant 0 : index
    %c0_2 = arith.constant 0 : index
    %1 = vector.load %arg2[%c0_1, %c0_2] : memref<8x1xf32, #tpu.memory_space<vmem>>, vector<8x1xf32>
    %2 = vector.broadcast %1 : vector<8x1xf32> to vector<8x256xf32>
    %3 = arith.mulf %0, %2 : vector<8x256xf32>
    %c0_3 = arith.constant 0 : index
    %c0_4 = arith.constant 0 : index
    %4 = vector.load %arg4[%c0_3, %c0_4] : memref<8x256xf32, #tpu.memory_space<vmem>>, vector<8x256xf32>
    tpu.vector_store %arg4[%c0_3, %c0_4], %3 {strides = array<i32>} : memref<8x256xf32, #tpu.memory_space<vmem>>, vector<8x256xf32>,
    return
  }
  func.func @transform_0(%arg0: i32, %arg1: i32) -> (i32, i32) {
    %c0_i32 = arith.constant 0 : i32
    %c0_i32_0 = arith.constant 0 : i32
    return %arg0, %c0_i32 : i32, i32
  }
  func.func @transform_1(%arg0: i32, %arg1: i32) -> (i32, i32) {
    %c0_i32 = arith.constant 0 : i32
    return %arg0, %arg1 : i32, i32
  }
  func.func @transform_2(%arg0: i32, %arg1: i32) -> (i32, i32) {
    %c0_i32 = arith.constant 0 : i32
    return %arg0, %arg1 : i32, i32
  }
}

</mosaic_0001>

<bundles_post_ra>
// kernel: tpu_custom_call.1
= control target key start
LH: loop header
LB: loop body
LE: loop exit
PB: predicated region body
PF: predicated region fallthrough
CT: control target
= control target key end

     0   :  { %7 = vsyncpa [#allocation3], 0  ;;  %s126_s0 = inlined_call_operand.vmem [shape: f32[8,1], index: 0, kind: input, shape index: {}]   ;;  %s127_s1 = inlined_call_operand.hbm [shape: f32[8,256], index: 1, kind: input, shape index: {}]   ;;  %s128_s2 = inlined_call_operand.hbm [shape: f32[8,256], index: 2, kind: output, shape index: {}]  }
   0x1   :  { %8 = vsyncpa [#allocation4], 0  ;;  %s99_s9 = smov [#allocation2]  }
   0x2   :  { %s17_s10 = sshll.u32 %s99_s9, 4  ;;  %s18_s10 = int_to_ptr.vmem [resolvable:$true] %s17_s10 }
   0x3   :  { %s63_s11 = scalar_lea.vmem %s18_s10, 256  ;;  %p68_p1 = scmp.lt.s32.totalorder %s18_s10, %s18_s10 }
   0x4   :  { %p64_p0 = scmp.ne.s32.totalorder %s18_s10, %s63_s11  ;;  %p69_p2 = scmp.lt.s32.totalorder %s63_s11, %s63_s11 }
   0x6   :  { %p70_p3 = por %p69_p2, %p68_p1 }
   0x8   :  { %p71_p4 = pnand %p70_p3, %p64_p0 }
   0xa   :  { %74 = shalt.err (!%p71_p4)
}
   0xb   :  { %20 = dma.hbm_to_vmem [thread:$0]  %s127_s1, 256, %s18_s10, [#allocation3]  }
   0xc   :  { %95 = dma.done.wait [#allocation3], 256  }
   0xd   :  { %96 = vsyncadd [#allocation3], 4294967040  ;;  %v100_v0 = vmov 0   ;;  %v26_v1 = vld [vmem:[%s126_s0] sm:$0xff]  ;;  %v25_v3 = vld [vmem:[#allocation2 + $0x8] sm:$0xff]  ;;  %s101_s16 = smov [#allocation5]  }
   0xe   :  { %54 = vset.pattern.permute.xlu0 %v100_v0  ;;  %v24_v2 = vld [vmem:[#allocation2] sm:$0xff]  ;;  %s42_s17 = sshll.u32 %s101_s16, 4  ;;  %s43_s17 = int_to_ptr.vmem [resolvable:$true] %s42_s17 }
   0xf   :  { %29 = vperm.xlu0 %54, %v26_v1   ;;  %s75_s1 = scalar_lea.vmem %s43_s17, 256  ;;  %p80_p6 = scmp.lt.s32.totalorder %s43_s17, %s43_s17 }
  0x10   :  { %p76_p5 = scmp.ne.s32.totalorder %s43_s17, %s75_s1  ;;  %p81_p7 = scmp.lt.s32.totalorder %s75_s1, %s75_s1 }
  0x12   :  { %p82_p8 = por %p81_p7, %p80_p6 }
  0x14   :  { %p83_p9 = pnand %p82_p8, %p76_p5 }
  0x8a   :  { %v30_v4 = vpop.permute.xlu0 %29 }
  0x8b   :  { %v32_v5 = vmul.f32 %v30_v4, %v24_v2  ;;  %v33_v6 = vmul.f32 %v30_v4, %v25_v3 }
  0x8d   :  { %34 = vst [vmem:[#allocation5] sm:$0xff] %v32_v5  ;;  %35 = vst [vmem:[#allocation5 + $0x8] sm:$0xff] %v33_v6 }
  0x8e   :  { %86 = shalt.err (!%p83_p9)
}
  0x8f   :  { %45 = dma.vmem_to_hbm [thread:$0]  %s43_s17, 256, %s128_s2, [#allocation4]  }
  0x90   :  { %97 = dma.done.wait [#allocation4], 256  }
  0x91   :  { %98 = vsyncadd [#allocation4], 4294967040 }
  0x92   :  { %49 = vsyncpa [#allocation3], 1 }
  0x93   :  { %50 = vsyncpa [#allocation4], 1 }

</bundles_post_ra>
